<compile_context>
chip_gen: v5e
topology: v5e:2x2
jax: 0.10.0
libtpu: 0.0.40
codegen_flags: <defaults>
</compile_context>

<pallas_src>
import functools

import jax
import jax.numpy as jnp
from jax import lax
from jax.experimental import pallas as pl
from jax.experimental.pallas import tpu as pltpu


def _round_up(x, m):
    return ((x + m - 1) // m) * m


def _lower_median(vals):
    """Lower median (torch.median semantics) of a list of equal-shape arrays."""
    M = len(vals)
    if M == 1:
        return vals[0]
    if M == 2:
        return jnp.minimum(vals[0], vals[1])
    if M == 3:
        a, b, c = vals
        lo = jnp.minimum(a, b)
        hi = jnp.maximum(a, b)
        return jnp.maximum(lo, jnp.minimum(hi, c))
    if M == 4:
        a, b, c, d = vals
        lo1, hi1 = jnp.minimum(a, b), jnp.maximum(a, b)
        lo2, hi2 = jnp.minimum(c, d), jnp.maximum(c, d)
        # 2nd smallest of 4 (= torch lower median for even M).
        return jnp.minimum(jnp.maximum(lo1, lo2), jnp.minimum(hi1, hi2))
    if M == 5:
        # McGuire 7-exchange median-of-5 network, unused exchange sides dropped
        # (10 min/max ops total; no second full copy kept alive).
        p0, p1, p2, p3, p4 = vals
        t0, t1 = jnp.minimum(p0, p1), jnp.maximum(p0, p1)   # s2(0,1)
        t3, t4 = jnp.minimum(p3, p4), jnp.maximum(p3, p4)   # s2(3,4)
        u3 = jnp.maximum(t0, t3)                            # s2(0,3): keep max
        u1 = jnp.minimum(t1, t4)                            # s2(1,4): keep min
        v1, v2 = jnp.minimum(u1, p2), jnp.maximum(u1, p2)   # s2(1,2)
        w2 = jnp.minimum(v2, u3)                            # s2(2,3): keep min
        return jnp.maximum(v1, w2)                          # s2(1,2): keep max
    # Generic fallback: full sorting network, pick the lower-middle element.
    v = list(vals)
    for i in range(M):
        for j in range(M - 1 - i):
            lo = jnp.minimum(v[j], v[j + 1])
            hi = jnp.maximum(v[j], v[j + 1])
            v[j], v[j + 1] = lo, hi
    return v[(M - 1) // 2]


def _ensemble_kernel(xk_ref, w_ref, b_ref, o_ref, r_ref, *,
                     num_models, hidden, strip):
    M = num_models
    H = hidden
    tb = o_ref.shape[0]

    # ---- MXU phase: one wide matmul covering all M models -----------------
    # (tb, K) @ (K, M*H) -> (tb, M*H), accumulate in f32, one wide bias add.
    r = jnp.dot(xk_ref[...], w_ref[...], preferred_element_type=jnp.float32)
    r_ref[...] = r + b_ref[...].astype(jnp.float32)

    if M == 1:
        # torch: std of a single sample is NaN -> all comparisons False ->
        # nothing masked -> output is the single model's result.
        o_ref[...] = r_ref[...].astype(o_ref.dtype)
        return

    # ---- VPU phase: strip-wise robust-mean reduction (f32) -----------------
    n_strips = tb // strip
    inv_m = 1.0 / float(M)
    inv_m1 = 1.0 / float(M - 1)

    def strip_body(s, carry):
        row = pl.multiple_of(s * strip, strip)
        rows = pl.ds(row, strip)
        results = [r_ref[rows, pl.ds(m * H, H)] for m in range(M)]

        median = _lower_median(results)

        mean = results[0]
        for rm in results[1:]:
            mean = mean + rm
        mean = mean * inv_m

        var = None
        for rm in results:
            d = rm - mean
            var = d * d if var is None else var + d * d
        std = jnp.sqrt(var * inv_m1)

        lower = median - 2.0 * std
        upper = median + 2.0 * std

        # nanmean over in-range members (median is always in range -> cnt>=1).
        acc = jnp.zeros_like(median)
        cnt = jnp.zeros_like(median)
        for rm in results:
            keep = jnp.logical_and(rm >= lower, rm <= upper)
            acc = acc + jnp.where(keep, rm, 0.0)
            cnt = cnt + jnp.where(keep, 1.0, 0.0)

        out = acc * pl.reciprocal(cnt, approx=True)
        o_ref[rows, :] = out.astype(o_ref.dtype)
        return carry

    lax.fori_loop(0, n_strips, strip_body, 0)


def ensemble_forward(x, known, W, V, b, *, batch_tile=256, strip=8,
                     mxu_dtype=jnp.float32):
    B, D_in = x.shape
    Bk, D_kn = known.shape
    M, _, H = W.shape
    assert Bk == B and V.shape == (M, D_kn, H) and b.shape == (M, H)
    assert M >= 1

    K = D_in + D_kn
    # Fuse the two contractions and all M models into a single weight matrix.
    # (In production these would be pre-fused once, not per call.)
    xk = jnp.concatenate([x, known], axis=1)                       # (B, K)
    w_flat = jnp.concatenate([W, V], axis=1)                       # (M, K, H)
    w_flat = jnp.transpose(w_flat, (1, 0, 2)).reshape(K, M * H)    # (K, M*H)
    b_flat = b.reshape(1, M * H).astype(jnp.float32)

    # bf16 at the MXU boundary on v6e/v7x (reduction stays f32 in-kernel).
    xk = xk.astype(mxu_dtype)
    w_flat = w_flat.astype(mxu_dtype)

    # Batch tiling: round up to a multiple of the tile; padded rows are
    # computed (on zero inputs) and sliced away afterwards.
    tb = max(strip, min(batch_tile, _round_up(B, strip)))
    tb = _round_up(tb, strip)
    B_pad = _round_up(B, tb)
    if B_pad != B:
        xk = jnp.pad(xk, ((0, B_pad - B), (0, 0)))
    grid = (B_pad // tb,)

    kernel = functools.partial(_ensemble_kernel, num_models=M, hidden=H,
                               strip=strip)

    out = pl.pallas_call(
        kernel,
        out_shape=jax.ShapeDtypeStruct((B_pad, H), jnp.float32),
        grid_spec=pltpu.PrefetchScalarGridSpec(
            num_scalar_prefetch=0,
            grid=grid,
            in_specs=[
                pl.BlockSpec((tb, K), lambda i: (i, 0)),
                pl.BlockSpec((K, M * H), lambda i: (0, 0)),
                pl.BlockSpec((1, M * H), lambda i: (0, 0)),
            ],
            out_specs=pl.BlockSpec((tb, H), lambda i: (i, 0)),
            scratch_shapes=[pltpu.VMEM((tb, M * H), jnp.float32)],
        ),
        compiler_params=pltpu.CompilerParams(
            dimension_semantics=("parallel",),
        ),
    )(xk, w_flat, b_flat)
    return out[:B]


def ensemble_reference(x, known, W, V, b):
    """Pure-JAX reference replicating the PyTorch semantics (f32)."""
    M = W.shape[0]
    results = jnp.stack(
        [x @ W[m] + known @ V[m] + b[m][None, :] for m in range(M)], axis=0
    )  # (M, B, H)
    srt = jnp.sort(results, axis=0)
    median = srt[(M - 1) // 2]                       # torch lower median
    std = jnp.std(results, axis=0, ddof=1)           # unbiased
    lower = median - 2.0 * std
    upper = median + 2.0 * std
    in_range = jnp.logical_and(results >= lower, results <= upper)
    acc = jnp.sum(jnp.where(in_range, results, 0.0), axis=0)
    cnt = jnp.sum(in_range.astype(jnp.float32), axis=0)
    return acc / cnt


if __name__ == "__main__":
    key = jax.random.PRNGKey(0)
    M, B, D_in, D_kn, H = 5, 40, 32, 16, 128

    k1, k2, k3, k4, k5 = jax.random.split(key, 5)
    x = jax.random.normal(k1, (B, D_in), dtype=jnp.float32)
    known = jax.random.normal(k2, (B, D_kn), dtype=jnp.float32)
    # Deterministic per-model parameters (synthetic, not a checkpoint load).
    W = 0.1 * jax.random.normal(k3, (M, D_in, H), dtype=jnp.float32)
    V = 0.1 * jax.random.normal(k4, (M, D_kn, H), dtype=jnp.float32)
    b = 0.05 * jax.random.normal(k5, (M, H), dtype=jnp.float32)

    # Small batch tile here so the demo exercises >= 2 grid steps AND the
    # non-divisible-batch padding path (B=40 -> padded 48, grid=3).
    out = ensemble_forward(x, known, W, V, b, batch_tile=16)
    out = jax.block_until_ready(out)

    ref = jax.block_until_ready(ensemble_reference(x, known, W, V, b))
    assert out.shape == (B, H)
    assert bool(jnp.all(jnp.isfinite(out)))
    assert bool(jnp.allclose(out, ref, rtol=2e-3, atol=2e-3))

    # Exercise the bf16-at-the-MXU fast path (v6e/v7x); the outlier mask is
    # threshold-sensitive under bf16 operands, so only check it runs & is
    # finite rather than bit-matching the f32 reference.
    out_bf16 = jax.block_until_ready(
        ensemble_forward(x, known, W, V, b, batch_tile=16,
                         mxu_dtype=jnp.bfloat16))
    assert bool(jnp.all(jnp.isfinite(out_bf16)))

    print("KERNEL_OK")
</pallas_src>

<mosaic_0001>
module attributes {stable_mosaic.version = 11 : i64} {
  func.func @_ensemble_kernel(%arg0: i32, %arg1: memref<16x48xf32, #tpu.memory_space<vmem>>, %arg2: memref<48x640xf32, #tpu.memory_space<vmem>>, %arg3: memref<1x640xf32, #tpu.memory_space<vmem>>, %arg4: memref<16x128xf32, #tpu.memory_space<vmem>>, %arg5: memref<16x640xf32, #tpu.memory_space<vmem>>) attributes {dimension_semantics = [#tpu.dimension_semantics<parallel>], iteration_bounds = array<i64: 3>, scalar_prefetch = 0 : i64, scratch_operands = 1 : i64, tpu.core_type = #tpu.core_type<tc>, window_params = [{transform_indices = @transform_0, window_bounds = array<i64: 16, 48>}, {pipeline_mode = #tpu.pipeline_mode<synchronous>, transform_indices = @transform_1, window_bounds = array<i64: 48, 640>}, {pipeline_mode = #tpu.pipeline_mode<synchronous>, transform_indices = @transform_2, window_bounds = array<i64: 1, 640>}, {transform_indices = @transform_3, window_bounds = array<i64: 16, 128>}]} {
    %c0 = arith.constant 0 : index
    %c0_0 = arith.constant 0 : index
    %0 = vector.load %arg1[%c0, %c0_0] : memref<16x48xf32, #tpu.memory_space<vmem>>, vector<16x48xf32>
    %c0_1 = arith.constant 0 : index
    %c0_2 = arith.constant 0 : index
    %1 = vector.load %arg2[%c0_1, %c0_2] : memref<48x640xf32, #tpu.memory_space<vmem>>, vector<48x640xf32>
    %cst = arith.constant dense<0.000000e+00> : vector<16x640xf32>
    %2 = tpu.matmul %0, %1, %cst {dimension_numbers = #tpu.dot_dimension_numbers<[1], [0], [0], [1], [0, 0, 1, 1], [], []>} : vector<16x48xf32>, vector<48x640xf32>, vector<16x640xf32> -> vector<16x640xf32>
    %c0_3 = arith.constant 0 : index
    %c0_4 = arith.constant 0 : index
    %3 = vector.load %arg3[%c0_3, %c0_4] : memref<1x640xf32, #tpu.memory_space<vmem>>, vector<1x640xf32>
    %4 = vector.broadcast %3 : vector<1x640xf32> to vector<16x640xf32>
    %5 = arith.addf %2, %4 : vector<16x640xf32>
    %c0_5 = arith.constant 0 : index
    %c0_6 = arith.constant 0 : index
    %6 = vector.load %arg5[%c0_5, %c0_6] : memref<16x640xf32, #tpu.memory_space<vmem>>, vector<16x640xf32>
    tpu.vector_store %arg5[%c0_5, %c0_6], %5 {strides = array<i32>} : memref<16x640xf32, #tpu.memory_space<vmem>>, vector<16x640xf32>,
    %c0_i32 = arith.constant 0 : i32
    %c2_i32 = arith.constant 2 : i32
    %7 = arith.addi %c0_i32, %c2_i32 : i32
    %c1_i32 = arith.constant 1 : i32
    scf.for %arg6 = %c0_i32 to %7 step %c1_i32  : i32 {
      %c8_i32 = arith.constant 8 : i32
      %8 = arith.muli %arg6, %c8_i32 : i32
      %9 = tpu.assume_multiple %8, 8 : i32
      %10 = arith.index_cast %9 : i32 to index
      %c0_8 = arith.constant 0 : index
      %11 = vector.load %arg5[%10, %c0_8] : memref<16x640xf32, #tpu.memory_space<vmem>>, vector<8x128xf32>
      %12 = arith.index_cast %9 : i32 to index
      %c128 = arith.constant 128 : index
      %13 = vector.load %arg5[%12, %c128] : memref<16x640xf32, #tpu.memory_space<vmem>>, vector<8x128xf32>
      %14 = arith.index_cast %9 : i32 to index
      %c256 = arith.constant 256 : index
      %15 = vector.load %arg5[%14, %c256] : memref<16x640xf32, #tpu.memory_space<vmem>>, vector<8x128xf32>
      %16 = arith.index_cast %9 : i32 to index
      %c384 = arith.constant 384 : index
      %17 = vector.load %arg5[%16, %c384] : memref<16x640xf32, #tpu.memory_space<vmem>>, vector<8x128xf32>
      %18 = arith.index_cast %9 : i32 to index
      %c512 = arith.constant 512 : index
      %19 = vector.load %arg5[%18, %c512] : memref<16x640xf32, #tpu.memory_space<vmem>>, vector<8x128xf32>
      %20 = arith.minimumf %11, %13 : vector<8x128xf32>
      %21 = arith.maximumf %11, %13 : vector<8x128xf32>
      %22 = arith.minimumf %17, %19 : vector<8x128xf32>
      %23 = arith.maximumf %17, %19 : vector<8x128xf32>
      %24 = arith.maximumf %20, %22 : vector<8x128xf32>
      %25 = arith.minimumf %21, %23 : vector<8x128xf32>
      %26 = arith.minimumf %25, %15 : vector<8x128xf32>
      %27 = arith.maximumf %25, %15 : vector<8x128xf32>
      %28 = arith.minimumf %27, %24 : vector<8x128xf32>
      %29 = arith.maximumf %26, %28 : vector<8x128xf32>
      %30 = arith.addf %11, %13 : vector<8x128xf32>
      %31 = arith.addf %30, %15 : vector<8x128xf32>
      %32 = arith.addf %31, %17 : vector<8x128xf32>
      %33 = arith.addf %32, %19 : vector<8x128xf32>
      %cst_9 = arith.constant 2.000000e-01 : f32
      %34 = vector.broadcast %cst_9 : f32 to vector<8x128xf32>
      %35 = arith.mulf %33, %34 : vector<8x128xf32>
      %36 = arith.subf %11, %35 : vector<8x128xf32>
      %37 = arith.mulf %36, %36 : vector<8x128xf32>
      %38 = arith.subf %13, %35 : vector<8x128xf32>
      %39 = arith.mulf %38, %38 : vector<8x128xf32>
      %40 = arith.addf %37, %39 : vector<8x128xf32>
      %41 = arith.subf %15, %35 : vector<8x128xf32>
      %42 = arith.mulf %41, %41 : vector<8x128xf32>
      %43 = arith.addf %40, %42 : vector<8x128xf32>
      %44 = arith.subf %17, %35 : vector<8x128xf32>
      %45 = arith.mulf %44, %44 : vector<8x128xf32>
      %46 = arith.addf %43, %45 : vector<8x128xf32>
      %47 = arith.subf %19, %35 : vector<8x128xf32>
      %48 = arith.mulf %47, %47 : vector<8x128xf32>
      %49 = arith.addf %46, %48 : vector<8x128xf32>
      %cst_10 = arith.constant 2.500000e-01 : f32
      %50 = vector.broadcast %cst_10 : f32 to vector<8x128xf32>
      %51 = arith.mulf %49, %50 : vector<8x128xf32>
      %52 = math.sqrt %51 : vector<8x128xf32>
      %cst_11 = arith.constant 2.000000e+00 : f32
      %53 = vector.broadcast %cst_11 : f32 to vector<8x128xf32>
      %54 = arith.mulf %53, %52 : vector<8x128xf32>
      %55 = arith.subf %29, %54 : vector<8x128xf32>
      %cst_12 = arith.constant 2.000000e+00 : f32
      %56 = vector.broadcast %cst_12 : f32 to vector<8x128xf32>
      %57 = arith.mulf %56, %52 : vector<8x128xf32>
      %58 = arith.addf %29, %57 : vector<8x128xf32>
      %cst_13 = arith.constant 0.000000e+00 : f32
      %59 = vector.broadcast %cst_13 : f32 to vector<8x128xf32>
      %cst_14 = arith.constant 0.000000e+00 : f32
      %60 = vector.broadcast %cst_14 : f32 to vector<8x128xf32>
      %61 = arith.cmpf oge, %11, %55 : vector<8x128xf32>
      %62 = arith.cmpf ole, %11, %58 : vector<8x128xf32>
      %63 = arith.andi %61, %62 : vector<8x128xi1>
      %cst_15 = arith.constant 0.000000e+00 : f32
      %64 = vector.broadcast %cst_15 : f32 to vector<8x128xf32>
      %65 = arith.select %63, %11, %64 : vector<8x128xi1>, vector<8x128xf32>
      %66 = arith.addf %59, %65 : vector<8x128xf32>
      %cst_16 = arith.constant 1.000000e+00 : f32
      %cst_17 = arith.constant 0.000000e+00 : f32
      %67 = vector.broadcast %cst_16 : f32 to vector<8x128xf32>
      %68 = vector.broadcast %cst_17 : f32 to vector<8x128xf32>
      %69 = arith.select %63, %67, %68 : vector<8x128xi1>, vector<8x128xf32>
      %70 = arith.addf %60, %69 : vector<8x128xf32>
      %71 = arith.cmpf oge, %13, %55 : vector<8x128xf32>
      %72 = arith.cmpf ole, %13, %58 : vector<8x128xf32>
      %73 = arith.andi %71, %72 : vector<8x128xi1>
      %cst_18 = arith.constant 0.000000e+00 : f32
      %74 = vector.broadcast %cst_18 : f32 to vector<8x128xf32>
      %75 = arith.select %73, %13, %74 : vector<8x128xi1>, vector<8x128xf32>
      %76 = arith.addf %66, %75 : vector<8x128xf32>
      %cst_19 = arith.constant 1.000000e+00 : f32
      %cst_20 = arith.constant 0.000000e+00 : f32
      %77 = vector.broadcast %cst_19 : f32 to vector<8x128xf32>
      %78 = vector.broadcast %cst_20 : f32 to vector<8x128xf32>
      %79 = arith.select %73, %77, %78 : vector<8x128xi1>, vector<8x128xf32>
      %80 = arith.addf %70, %79 : vector<8x128xf32>
      %81 = arith.cmpf oge, %15, %55 : vector<8x128xf32>
      %82 = arith.cmpf ole, %15, %58 : vector<8x128xf32>
      %83 = arith.andi %81, %82 : vector<8x128xi1>
      %cst_21 = arith.constant 0.000000e+00 : f32
      %84 = vector.broadcast %cst_21 : f32 to vector<8x128xf32>
      %85 = arith.select %83, %15, %84 : vector<8x128xi1>, vector<8x128xf32>
      %86 = arith.addf %76, %85 : vector<8x128xf32>
      %cst_22 = arith.constant 1.000000e+00 : f32
      %cst_23 = arith.constant 0.000000e+00 : f32
      %87 = vector.broadcast %cst_22 : f32 to vector<8x128xf32>
      %88 = vector.broadcast %cst_23 : f32 to vector<8x128xf32>
      %89 = arith.select %83, %87, %88 : vector<8x128xi1>, vector<8x128xf32>
      %90 = arith.addf %80, %89 : vector<8x128xf32>
      %91 = arith.cmpf oge, %17, %55 : vector<8x128xf32>
      %92 = arith.cmpf ole, %17, %58 : vector<8x128xf32>
      %93 = arith.andi %91, %92 : vector<8x128xi1>
      %cst_24 = arith.constant 0.000000e+00 : f32
      %94 = vector.broadcast %cst_24 : f32 to vector<8x128xf32>
      %95 = arith.select %93, %17, %94 : vector<8x128xi1>, vector<8x128xf32>
      %96 = arith.addf %86, %95 : vector<8x128xf32>
      %cst_25 = arith.constant 1.000000e+00 : f32
      %cst_26 = arith.constant 0.000000e+00 : f32
      %97 = vector.broadcast %cst_25 : f32 to vector<8x128xf32>
      %98 = vector.broadcast %cst_26 : f32 to vector<8x128xf32>
      %99 = arith.select %93, %97, %98 : vector<8x128xi1>, vector<8x128xf32>
      %100 = arith.addf %90, %99 : vector<8x128xf32>
      %101 = arith.cmpf oge, %19, %55 : vector<8x128xf32>
      %102 = arith.cmpf ole, %19, %58 : vector<8x128xf32>
      %103 = arith.andi %101, %102 : vector<8x128xi1>
      %cst_27 = arith.constant 0.000000e+00 : f32
      %104 = vector.broadcast %cst_27 : f32 to vector<8x128xf32>
      %105 = arith.select %103, %19, %104 : vector<8x128xi1>, vector<8x128xf32>
      %106 = arith.addf %96, %105 : vector<8x128xf32>
      %cst_28 = arith.constant 1.000000e+00 : f32
      %cst_29 = arith.constant 0.000000e+00 : f32
      %107 = vector.broadcast %cst_28 : f32 to vector<8x128xf32>
      %108 = vector.broadcast %cst_29 : f32 to vector<8x128xf32>
      %109 = arith.select %103, %107, %108 : vector<8x128xi1>, vector<8x128xf32>
      %110 = arith.addf %100, %109 : vector<8x128xf32>
      %111 = tpu.reciprocal %110 {approx = true} : vector<8x128xf32> -> vector<8x128xf32>
      %112 = arith.mulf %106, %111 : vector<8x128xf32>
      %113 = arith.index_cast %9 : i32 to index
      %c0_30 = arith.constant 0 : index
      %114 = vector.load %arg4[%113, %c0_30] : memref<16x128xf32, #tpu.memory_space<vmem>>, vector<8x128xf32>
      tpu.vector_store %arg4[%113, %c0_30], %112 {strides = array<i32>} : memref<16x128xf32, #tpu.memory_space<vmem>>, vector<8x128xf32>,
    }
    %c2_i32_7 = arith.constant 2 : i32
    return
  }
  func.func @transform_0(%arg0: i32) -> (i32, i32) {
    %c0_i32 = arith.constant 0 : i32
    %c0_i32_0 = arith.constant 0 : i32
    return %arg0, %c0_i32 : i32, i32
  }
  func.func @transform_1(%arg0: i32) -> (i32, i32) {
    %c0_i32 = arith.constant 0 : i32
    %c0_i32_0 = arith.constant 0 : i32
    %c0_i32_1 = arith.constant 0 : i32
    return %c0_i32, %c0_i32_0 : i32, i32
  }
  func.func @transform_2(%arg0: i32) -> (i32, i32) {
    %c0_i32 = arith.constant 0 : i32
    %c0_i32_0 = arith.constant 0 : i32
    %c0_i32_1 = arith.constant 0 : i32
    return %c0_i32, %c0_i32_0 : i32, i32
  }
  func.func @transform_3(%arg0: i32) -> (i32, i32) {
    %c0_i32 = arith.constant 0 : i32
    %c0_i32_0 = arith.constant 0 : i32
    return %arg0, %c0_i32 : i32, i32
  }
}

</mosaic_0001>

<bundles_post_ra>
// kernel: tpu_custom_call.1
= control target key start
LH: loop header
LB: loop body
LE: loop exit
PB: predicated region body
PF: predicated region fallthrough
CT: control target
= control target key end

     0   :  { %8 = vsyncpa [#allocation4], 0  ;;  %s1163_s0 = inlined_call_operand.hbm [shape: f32[48,48], index: 0, kind: input, shape index: {}]   ;;  %s1164_s1 = inlined_call_operand.hbm [shape: f32[48,640], index: 1, kind: input, shape index: {}]   ;;  %s1165_s2 = inlined_call_operand.hbm [shape: f32[1,640], index: 2, kind: input, shape index: {}]   ;;  %s1166_s3 = inlined_call_operand.hbm [shape: f32[48,128], index: 3, kind: output, shape index: {}]  }
   0x1   :  { %10 = vsyncpa [#allocation4 + $0x1], 0 }
   0x2   :  { %11 = vsyncpa [#allocation7], 0 }
   0x3   :  { %12 = vsyncpa [#allocation5], 0 }
   0x4   :  { %14 = vsyncpa [#allocation5 + $0x1], 0  ;;  %s942_s12 = smov 0   ;;  %s944_s13 = smov 0  }
   0x5   :  { %s946_s14 = smov 0   ;;  %s948_s15 = smov 0  }
   0x6 LB: > { %s963_s16 = sadd.s32 4294967295, %s907_s15   ;;  %s618_s17 = sadd.s32 4294967294, %s907_s15   ;;  %s907_s15 = sphi %s948_s15, %s1175_s15   ;;  %s903_s14 = sphi %s946_s14, %s1174_s14   ;;  %s899_s13 = sphi %s944_s13, %s1173_s13   ;;  %s895_s12 = sphi %s942_s12, %s1172_s12  }
   0x7   : > { %p40_p0 = scmp.ne.s32.totalorder %s899_s13, %s895_s12  ;;  %p41_p1 = scmp.eq.s32.totalorder %s963_s16, 0 }
   0x8   : > { %p106_p2 = scmp.eq.s32.totalorder %s963_s16, 2  ;;  %p112_p3 = scmp.eq.s32.totalorder %s618_s17, 2 }
   0x9   : > { %p972_p4 = por %p41_p1, %p40_p0  ;;  %p619_p5 = scmp.ge.s32.totalorder %s907_s15, 1 }
   0xa   : > { %p977_p6 = por %p112_p3, %p40_p0  ;;  %p119_p7 = scmp.lt.s32.totalorder %s907_s15, 4 }
   0xb   : > { %s130_s22 = sshll.u32 %s1164_s1, 4  ;;  %s913_s24 = smov [#allocation6]   ;;  %s131_s22 = int_to_ptr.hbm [resolvable:$true] %s130_s22 }
   0xc   : > { %p985_p8 = pnand %p619_p5, %p119_p7  ;;  %s132_s25 = sshll.u32 %s913_s24, 4  ;;  %s133_s25 = int_to_ptr.vmem [resolvable:$true] %s132_s25 }
   0xd   : > { %s145_s28 = sshll.u32 %s1165_s2, 4  ;;  %s914_s29 = smov 640   ;;  %s146_s28 = int_to_ptr.hbm [resolvable:$true] %s145_s28 }
   0xe   : > { %p669_p9 = pneg %p985_p8  ;;  %s915_s30 = smov 40  }
   0xf   : > { %s916_s4 = smov [#allocation8]   ;;  %s997_s6 = sadd.s32 1, %s907_s15  }
  0x10   : > { %p670_p10 = pnand %p669_p9, %p41_p1  ;;  %s147_s5 = sshll.u32 %s916_s4, 4  ;;  %s148_s5 = int_to_ptr.vmem [resolvable:$true] %s147_s5 }
  0x11   : > { %s27_s7 = sadd.s32 1, %s903_s14  ;;  %s24_s8 = ssub.s32 %s907_s15, %s997_s6 }
  0x12   : > { %672 = dma.hbm_to_vmem [thread:$0]  (!%p670_p10), %s131_s22, 3840, %s133_s25, [#allocation7], %s914_s29, %s914_s29, %s915_s30  }
  0x13   : > { %675 = dma.hbm_to_vmem [thread:$0]  (!%p670_p10), %s146_s28, 80, %s148_s5, [#allocation7]  }
  0x14   : > { %p34_p11 = scmp.ne.s32.totalorder %s903_s14, %s899_s13  ;;  %p25_p12 = scmp.eq.s32.totalorder %s24_s8, 0 }
  0x15   : > { %p35_p13 = scmp.eq.s32.totalorder %s907_s15, 0  ;;  %p686_p3 = scmp.lt.s32.totalorder %s907_s15, 3 }
  0x16   : > { %p1007_p0 = por %p106_p2, %p34_p11  ;;  %s158_s11 = sand.u32 1, %s903_s14  }
  0x17   : > { %s1013_s10 = scalar_select %p25_p12, %s903_s14, %s27_s7  }
  0x18   : > { %p36_p5 = por %p35_p13, %p34_p11  ;;  %s623_s17 = sshll.u32 %s158_s11, 4 }
  0x19   : > { %s648_s20 = sshll.u32 %s907_s15, 4  ;;  %s162_s25 = scalar_lea.vmem [#allocation3], %s623_s17 }
  0x1a   : > { %s167_s24 = scalar_lea.hbm %s1163_s0, %s648_s20  ;;  %s170_s26 = sshll.u32 %s162_s25, 4  ;;  %s171_s26 = int_to_ptr.vmem [resolvable:$true] %s170_s26 }
  0x1b   : > { %s168_s27 = sshll.u32 %s167_s24, 4  ;;  %p1020_p2 = pnand %p686_p3, %p36_p5  ;;  %s169_s27 = int_to_ptr.hbm [resolvable:$true] %s168_s27 }
  0x1c   : > { %s159_s29 = scalar_lea.sflag [#allocation4], %s158_s11  ;;  %s803_s30 = sshra.s32 %s169_s27, 4  ;;  %s804_s30 = int_to_ptr.hbm [resolvable:$true] %s803_s30 }
  0x1d   : > { %s805_s4 = scalar_lea.hbm %s804_s30, 16  ;;  %p807_p9 = pneg %p1020_p2 }
  0x1e   : > { %p806_p7 = scmp.ne.s32.totalorder %s804_s30, %s805_s4  ;;  %s810_s8 = scalar_lea.hbm %s1163_s0, 48 }
  0x1f   : > { %p811_p12 = scmp.lt.s32.totalorder %s804_s30, %s1163_s0  ;;  %p812_p13 = scmp.lt.s32.totalorder %s810_s8, %s805_s4 }
  0x20   : > { %p808_p10 = pnand %p807_p9, %p806_p7 }
  0x21   : > { %p813_p3 = por %p812_p13, %p811_p12 }
  0x22   : > { %p809_p11 = pneg %p808_p10 }
  0x24   : > { %p814_p5 = pnand %p813_p3, %p809_p11 }
  0x26   : > { %817 = shalt.err (!%p814_p5)
}
  0x27   : > { %s917_s11 = smov 128   ;;  %s918_s21 = smov 8  }
  0x28   : > { %679 = dma.hbm_to_vmem [thread:$0]  (!%p1020_p2), %s169_s27, 256, %s171_s26, %s159_s29, %s917_s11, %s917_s11, %s918_s21  }
  0x29   : > { %182 = sbr.rel (%p985_p8) target bundleno = 290 (0x122), region = 32  ;;  %s1037_s22 = sand.u32 (!%p985_p8), 1, %s899_s13  }
  0x2a   : > { %s627_s24 = sshll.u32 (!%p985_p8), %s1037_s22, 4  ;;  %s185_s25 = scalar_lea.sflag (!%p985_p8), [#allocation4], %s1037_s22 }
  0x2b   : > { %s1043_s30 = scalar_lea.vmem (!%p985_p8), [#allocation3], %s627_s24 }
  0x2e   : > { %882 = dma.done.wait (%p972_p4), %s185_s25, 256  }
  0x2f   : > { %884 = vsyncadd (%p972_p4), %s185_s25, 4294967040 }
  0x30   : > { %886 = dma.done.wait (%p41_p1), [#allocation7], 3920  }
  0x31   : > { %888 = vsyncadd (%p41_p1), [#allocation7], 4294963376  ;;  %v251_v0 = vld [vmem:[#allocation6 + $0xc8] sm:$0xff]  ;;  %v252_v1 = vld [vmem:[#allocation6 + $0xd0] sm:$0xff]  ;;  %vm268_vm0 = vcmask 392192   ;;  %s1067_s18 = scalar_lea.vmem [#allocation9], %s627_s24 }
  0x32   : > { %v246_v2 = vld [vmem:[#allocation6 + $0xa0] sm:$0xff]  ;;  %285 = vmatpush.msra.mxu0 %v251_v0  ;;  %308 = vmatpush.msra.mxu1 %v252_v1  ;;  %v247_v3 = vld [vmem:[#allocation6 + $0xa8] sm:$0xff]  ;;  %v253_v4 = vld [vmem:[#allocation6 + $0xd8] sm:$0xff]  ;;  %s1069_s23 = smov 0  }
  0x33   : > { %v254_v5 = vld [vmem:[#allocation6 + $0xe0] sm:$0xff]  ;;  %331 = vmatpush.msra.mxu2 %v253_v4  ;;  %v241_v6 = vld [vmem:[#allocation6 + $0x78] sm:$0xff]  ;;  %v248_v8 = vld [vmem:[#allocation6 + $0xb0] sm:$0xff] }
  0x34   : > { %354 = vmatpush.msra.mxu3 %v254_v5  ;;  %v242_v7 = vld [vmem:[#allocation6 + $0x80] sm:$0xff]  ;;  %286 = vmatpush.msra.mxu0 %v246_v2  ;;  %v249_v9 = vld [vmem:[#allocation6 + $0xb8] sm:$0xff]  ;;  %v236_v10 = vld [vmem:[#allocation6 + $0x50] sm:$0xff] }
  0x35   : > { %309 = vmatpush.msra.mxu1 %v247_v3  ;;  %332 = vmatpush.msra.mxu2 %v248_v8  ;;  %v237_v11 = vld [vmem:[#allocation6 + $0x58] sm:$0xff]  ;;  %v243_v12 = vld [vmem:[#allocation6 + $0x88] sm:$0xff]  ;;  %v244_v13 = vld [vmem:[#allocation6 + $0x90] sm:$0xff] }
  0x36   : > { %355 = vmatpush.msra.mxu3 %v249_v9  ;;  %287 = vmatpush.msra.mxu0 %v241_v6  ;;  %v238_v14 = vld [vmem:[#allocation6 + $0x60] sm:$0xff]  ;;  %v239_v15 = vld [vmem:[#allocation6 + $0x68] sm:$0xff]  ;;  %v232_v17 = vld [vmem:[#allocation6 + $0x30] sm:$0xff] }
  0x37   : > { %310 = vmatpush.msra.mxu1 %v242_v7  ;;  %333 = vmatpush.msra.mxu2 %v243_v12  ;;  %v231_v16 = vld [vmem:[#allocation6 + $0x28] sm:$0xff]  ;;  %v233_v18 = vld [vmem:[#allocation6 + $0x38] sm:$0xff]  ;;  %v234_v19 = vld [vmem:[#allocation6 + $0x40] sm:$0xff] }
  0x38   : > { %356 = vmatpush.msra.mxu3 %v244_v13  ;;  %288 = vmatpush.msra.mxu0 %v236_v10  ;;  %v226_v20 = vld [vmem:[#allocation6] sm:$0xff]  ;;  %v227_v21 = vld [vmem:[#allocation6 + $0x8] sm:$0xff]  ;;  %v228_v24 = vld [vmem:[#allocation6 + $0x10] sm:$0xff] }
  0x39   : > { %311 = vmatpush.msra.mxu1 %v237_v11  ;;  %334 = vmatpush.msra.mxu2 %v238_v14  ;;  %v224_v22 = vld [vmem:[%s1043_s30] sm:$0xff]  ;;  %v255_v23 = vld [vmem:[#allocation6 + $0xe8] sm:$0xff]  ;;  %v229_v25 = vld [vmem:[#allocation6 + $0x18] sm:$0xff] }
  0x3a   : > { %357 = vmatpush.msra.mxu3 %v239_v15  ;;  %289 = vmatpush.msra.mxu0 %v231_v16  ;;  %v250_v26 = vld [vmem:[#allocation6 + $0xc0] sm:$0xff]  ;;  %v245_v27 = vld [vmem:[#allocation6 + $0x98] sm:$0xff]  ;;  %v240_v29 = vld [vmem:[#allocation6 + $0x70] sm:$0xff] }
  0x3b   : > { %312 = vmatpush.msra.mxu1 %v232_v17  ;;  %335 = vmatpush.msra.mxu2 %v233_v18  ;;  %v225_v28 = vld [vmem:[%s1043_s30 + $0x8] sm:$0xff]  ;;  %v230_v31 = vld [vmem:[#allocation6 + $0x20] sm:$0xff]  ;;  %v256_v32 = vld [vmem:[#allocation8] sm:$0x1f] }
  0x3c   : > { %358 = vmatpush.msra.mxu3 %v234_v19  ;;  %290 = vmatpush.msra.mxu0 %v226_v20  ;;  %v235_v30 = vld [vmem:[#allocation6 + $0x48] sm:$0xff]  ;;  %v258_v33 = vperm.slane %v256_v32, 0  ;;  %v259_v34 = vperm.slane %v256_v32, 1  ;;  %v260_v39 = vperm.slane %v256_v32, 2  ;;  %v261_v40 = vperm.slane %v256_v32, 3 }
  0x3d   : > { %313 = vmatpush.msra.mxu1 %v227_v21  ;;  %631 = vmatmul.msk.f32.vlgmr.msra.gmra.mxu0 %vm268_vm0, %v224_v22  ;;  %v262_v49 = vperm.slane %v256_v32, 4 }
  0x3e   : > { %633 = vmatmul.msk.f32.vlgmr.msra.gmra.mxu1 %vm268_vm0, %v224_v22  ;;  %377 = vmatpush.msrb.mxu0 %v255_v23 }
  0x3f   : > { %651 = vmatpush.msrb.mxu1 %v255_v23  ;;  %336 = vmatpush.msra.mxu2 %v228_v24 }
  0x40   : > { %359 = vmatpush.msra.mxu3 %v229_v25  ;;  %635 = vmatmul.msk.f32.vlgmr.msra.gmra.mxu2 %vm268_vm0, %v224_v22 }
  0x41   : > { %637 = vmatmul.msk.f32.vlgmr.msra.gmra.mxu3 %vm268_vm0, %v224_v22  ;;  %378 = vmatpush.msrb.mxu0 %v250_v26 }
  0x42   : > { %652 = vmatpush.msrb.mxu1 %v250_v26 }
  0x43   : > { %379 = vmatpush.msrb.mxu0 %v245_v27 }
  0x44   : > { %653 = vmatpush.msrb.mxu1 %v245_v27 }
  0x45   : > { %632 = vmatmul.msk.f32.gmra.mxu0 %vm268_vm0, %v225_v28 }
  0x46   : > { %634 = vmatmul.msk.f32.gmra.mxu1 %vm268_vm0, %v225_v28  ;;  %380 = vmatpush.msrb.mxu0 %v240_v29 }
  0x47   : > { %654 = vmatpush.msrb.mxu1 %v240_v29 }
  0x48   : > { %636 = vmatmul.msk.f32.gmra.mxu2 %vm268_vm0, %v225_v28  ;;  %381 = vmatpush.msrb.mxu0 %v235_v30 }
  0x49   : > { %638 = vmatmul.msk.f32.gmra.mxu3 %vm268_vm0, %v225_v28  ;;  %655 = vmatpush.msrb.mxu1 %v235_v30 }
  0x4a   : > { %382 = vmatpush.msrb.mxu0 %v230_v31 }
  0x4b   : > { %656 = vmatpush.msrb.mxu1 %v230_v31 }
  0x4d   : > { %639 = vmatmul.msk.f32.vlgmr.msrb.gmra.mxu0 %vm268_vm0, %v224_v22 }
  0x4e   : > { %640 = vmatmul.msk.f32.vlgmr.msrb.gmra.mxu1 %vm268_vm0, %v225_v28 }
  0xba   : > { %v292_v35 = vpop.f32.mrf.mxu0 }
  0xbb   : > { %v315_v36 = vpop.f32.mrf.mxu1  ;;  %v293_v37 = vadd.f32 %v292_v35, %v258_v33 }
  0xbc   : > { %v316_v38 = vadd.f32 %v315_v36, %v259_v34 }
  0xbd   : > { %390 = vst [vmem:[#allocation2] sm:$0xff] %v293_v37 }
  0xbe   : > { %391 = vst [vmem:[#allocation2 + $0x8] sm:$0xff] %v316_v38 }
  0xc2   : > { %v295_v41 = vpop.f32.mrf.mxu0 }
  0xc3   : > { %v318_v42 = vpop.f32.mrf.mxu1  ;;  %v296_v43 = vadd.f32 %v295_v41, %v258_v33  ;;  %v338_v45 = vpop.f32.mrf.mxu2 }
  0xc4   : > { %v319_v44 = vadd.f32 %v318_v42, %v259_v34  ;;  %v361_v46 = vpop.f32.mrf.mxu3  ;;  %v339_v47 = vadd.f32 %v338_v45, %v260_v39 }
  0xc5   : > { %v362_v48 = vadd.f32 %v361_v46, %v261_v40  ;;  %395 = vst [vmem:[#allocation2 + $0x28] sm:$0xff] %v296_v43 }
  0xc6   : > { %396 = vst [vmem:[#allocation2 + $0x30] sm:$0xff] %v319_v44 }
  0xc7   : > { %392 = vst [vmem:[#allocation2 + $0x10] sm:$0xff] %v339_v47 }
  0xc8   : > { %393 = vst [vmem:[#allocation2 + $0x18] sm:$0xff] %v362_v48 }
  0xca   : > { %v384_v50 = vpop.f32.mrf.mxu0 }
  0xcb   : > { %v387_v51 = vpop.f32.mrf.mxu1  ;;  %v341_v52 = vpop.f32.mrf.mxu2  ;;  %v385_v54 = vadd.f32 %v384_v50, %v262_v49 }
  0xcc   : > { %v364_v53 = vpop.f32.mrf.mxu3  ;;  %v342_v55 = vadd.f32 %v341_v52, %v260_v39  ;;  %v388_v57 = vadd.f32 %v387_v51, %v262_v49 }
  0xcd   : > { %v365_v56 = vadd.f32 %v364_v53, %v261_v40  ;;  %394 = vst [vmem:[#allocation2 + $0x20] sm:$0xff] %v385_v54 }
  0xce   : > { %397 = vst [vmem:[#allocation2 + $0x38] sm:$0xff] %v342_v55 }
  0xcf   : > { %398 = vst [vmem:[#allocation2 + $0x40] sm:$0xff] %v365_v56 }
  0xd0   : > { %399 = vst [vmem:[#allocation2 + $0x48] sm:$0xff] %v388_v57 }
  0xd1 LB: >> { %s641_s26 = sshll.u32 %s911_s23, 3  ;;  %v919_v43 = vmov 0.0   ;;  %s405_s23 = sadd.s32 1, %s911_s23   ;;  %s911_s23 = sphi %s1069_s23, %s405_s23  }
  0xd2   : >> { %s407_s27 = sshra.s32 %s641_s26, 3  ;;  %s499_s4 = scalar_lea.vmem %s1067_s18, %s641_s26 [#allocation9] }
  0xd3   : >> { %s649_s28 = smul.u32 40, %s407_s27  ;;  %p402_p1 = scmp.ge.s32.totalorder %s405_s23, 2  }
  0xd4   : > { %s650_s5 = sshll.u32 (%p402_p1), %s963_s16, 4  ;;  %s514_s20 = sshll.u32 (%p402_p1), %s1067_s18, 4  ;;  %s515_s20 = int_to_ptr.vmem [resolvable:$true] %s514_s20 }
  0xd5   : >> { %s411_s29 = scalar_lea.vmem [#allocation2], %s649_s28  ;;  %s513_s17 = scalar_lea.hbm (%p402_p1), %s1166_s3, %s650_s5 }
  0xd6   : > { %s516_s11 = sshll.u32 (%p402_p1), %s513_s17, 4  ;;  %s502_s21 = scalar_lea.sflag (%p402_p1), [#allocation5], %s1037_s22  ;;  %s517_s11 = int_to_ptr.hbm [resolvable:$true] %s516_s11 }
  0xd7   : >> { %v1077_v58 = vld [vmem:[%s411_s29] sm:$0xff]  ;;  %v1079_v59 = vld [vmem:[%s411_s29 + $0x8] sm:$0xff]  ;;  %v1081_v60 = vld [vmem:[%s411_s29 + $0x10] sm:$0xff]  ;;  %s847_s24 = sshra.s32 (%p402_p1), %s517_s11, 4  ;;  %s853_s16 = scalar_lea.hbm (%p402_p1), %s1166_s3, 48  ;;  %s848_s24 = int_to_ptr.hbm [resolvable:$true] %s847_s24 }
  0xd8   : >> { %v427_v61 = vadd.f32 %v1079_v59, %v1077_v58  ;;  %v1085_v62 = vld [vmem:[%s411_s29 + $0x18] sm:$0xff]  ;;  %v1088_v0 = vld [vmem:[%s411_s29 + $0x20] sm:$0xff]  ;;  %v418_v19 = vmax.f32 %v1077_v58, %v1079_v59  ;;  %v417_v22 = vmin.f32 %v1077_v58, %v1079_v59  ;;  %s849_s25 = scalar_lea.hbm (%p402_p1), %s848_s24, 16  ;;  %p854_p7 = scmp.lt.s32.totalorder (%p402_p1), %s848_s24, %s1166_s3 }
  0xd9   : >> { %v420_v20 = vmax.f32 %v1085_v62, %v1088_v0  ;;  %v419_v23 = vmin.f32 %v1085_v62, %v1088_v0  ;;  %p850_p4 = scmp.ne.s32.totalorder (%p402_p1), %s848_s24, %s849_s25  ;;  %p855_p9 = scmp.lt.s32.totalorder (%p402_p1), %s853_s16, %s849_s25 }
  0xda   : >> { %v428_v63 = vadd.f32 %v427_v61, %v1081_v60 }
  0xdb   : >> { %v422_v24 = vmin.f32 %v418_v19, %v420_v20  ;;  %v421_v27 = vmax.f32 %v417_v22, %v419_v23  ;;  %p851_p8 = pnand (%p402_p1), %p850_p4, %p1007_p0  ;;  %p856_p10 = por (%p402_p1), %p855_p9, %p854_p7 }
  0xdc   : >> { %v429_v1 = vadd.f32 %v428_v63, %v1085_v62 }
  0xdd   : >> { %v424_v28 = vmax.f32 %v422_v24, %v1081_v60  ;;  %v423_v31 = vmin.f32 %v422_v24, %v1081_v60  ;;  %p852_p2 = pneg (%p402_p1), %p851_p8 }
  0xde   : >> { %v430_v2 = vadd.f32 %v429_v1, %v1088_v0 }
  0xdf   : >> { %v425_v32 = vmin.f32 %v424_v28, %v421_v27  ;;  %p857_p11 = pnand (%p402_p1), %p856_p10, %p852_p2 }
  0xe0   : >> { %v431_v3 = vmul.f32 0.2, %v430_v2 }
  0xe1   : >> { %v426_v36 = vmax.f32 %v423_v31, %v425_v32 }
  0xe2   : >> { %v432_v4 = vsub.f32 %v1077_v58, %v431_v3  ;;  %v434_v5 = vsub.f32 %v1079_v59, %v431_v3  ;;  %v437_v6 = vsub.f32 %v1081_v60, %v431_v3  ;;  %v440_v7 = vsub.f32 %v1085_v62, %v431_v3 }
  0xe3   : >> { %v443_v11 = vsub.f32 %v1088_v0, %v431_v3 }
  0xe4   : >> { %v433_v8 = vmul.f32 %v432_v4, %v432_v4  ;;  %v435_v9 = vmul.f32 %v434_v5, %v434_v5  ;;  %v438_v10 = vmul.f32 %v437_v6, %v437_v6  ;;  %v441_v13 = vmul.f32 %v440_v7, %v440_v7 }
  0xe5   : >> { %v444_v15 = vmul.f32 %v443_v11, %v443_v11 }
  0xe6   : >> { %v436_v12 = vadd.f32 %v435_v9, %v433_v8 }
  0xe8   : >> { %v439_v14 = vadd.f32 %v438_v10, %v436_v12 }
  0xea   : >> { %v442_v16 = vadd.f32 %v441_v13, %v439_v14 }
  0xec   : >> { %v445_v17 = vadd.f32 %v444_v15, %v442_v16 }
  0xee   : >> { %v446_v18 = vmul.f32 0.25, %v445_v17 }
  0xf0   : >> { %739 = vrsqrt.f32 %v446_v18  ;;  %vm454_vm1 = vcmp.eq.f32.partialorder %v446_v18, inf  ;;  %v457_v34 = vand.u32 2147483648, %v446_v18  ;;  %vm456_vm2 = vcmp.eq.f32.partialorder %v446_v18, 0.0 }
  0xf6   : >> { %v740_v21 = vpop.eup %739 }
  0xf7   : >> { %v448_v25 = vmul.f32 %v740_v21, %v446_v18 }
  0xf9   : >> { %v449_v26 = vmul.f32 %v740_v21, %v448_v25 }
  0xfb   : >> { %v450_v29 = vmul.f32 0.5, %v449_v26 }
  0xfd   : >> { %v451_v30 = vsub.f32 1.5, %v450_v29 }
  0xff   : >> { %v452_v33 = vmul.f32 %v740_v21, %v451_v30 }
 0x101   : >> { %v453_v35 = vmul.f32 %v452_v33, %v446_v18 }
 0x103   : >> { %v455_v37 = vsel %vm454_vm1, %v446_v18, %v453_v35 }
 0x104   : >> { %v458_v38 = vsel %vm456_vm2, %v457_v34, %v455_v37 }
 0x105   : >> { %v459_v39 = vmul.f32 2.0, %v458_v38 }
 0x107   : >> { %v460_v40 = vsub.f32 %v426_v36, %v459_v39  ;;  %v461_v41 = vadd.f32 %v459_v39, %v426_v36 }
 0x109   : >> { %vm462_vm3 = vcmp.ge.f32.partialorder %v1077_v58, %v460_v40  ;;  %vm463_vm4 = vcmp.le.f32.partialorder %v1077_v58, %v461_v41  ;;  %vm469_vm5 = vcmp.ge.f32.partialorder %v1079_v59, %v460_v40  ;;  %vm470_vm6 = vcmp.le.f32.partialorder %v1079_v59, %v461_v41 }
 0x10a   : >> { %vm464_vm7 = vmand %vm462_vm3, %vm463_vm4  ;;  %vm476_vm8 = vcmp.ge.f32.partialorder %v1081_v60, %v460_v40  ;;  %vm477_vm9 = vcmp.le.f32.partialorder %v1081_v60, %v461_v41  ;;  %vm483_vm10 = vcmp.ge.f32.partialorder %v1085_v62, %v460_v40  ;;  %vm484_vm11 = vcmp.le.f32.partialorder %v1085_v62, %v461_v41 }
 0x10b   : >> { %v465_v42 = vsel %vm464_vm7, %v1077_v58, 0.0  ;;  %v467_v44 = vsel %vm464_vm7, 1.0, %v919_v43  ;;  %vm471_vm12 = vmand %vm469_vm5, %vm470_vm6  ;;  %vm490_vm13 = vcmp.ge.f32.partialorder %v1088_v0, %v460_v40  ;;  %vm491_vm14 = vcmp.le.f32.partialorder %v1088_v0, %v461_v41 }
 0x10c   : >> { %v472_v45 = vsel %vm471_vm12, %v1079_v59, 0.0  ;;  %v474_v46 = vsel %vm471_vm12, 1.0, %v919_v43  ;;  %vm478_vm15 = vmand %vm476_vm8, %vm477_vm9 }
 0x10d   : >> { %v473_v47 = vadd.f32 %v472_v45, %v465_v42  ;;  %v475_v48 = vadd.f32 %v474_v46, %v467_v44  ;;  %v479_v49 = vsel %vm478_vm15, %v1081_v60, 0.0  ;;  %v481_v50 = vsel %vm478_vm15, 1.0, %v919_v43  ;;  %vm485_vm0 = vmand %vm483_vm10, %vm484_vm11 }
 0x10e   : >> { %v488_v51 = vsel %vm485_vm0, 1.0, %v919_v43  ;;  %vm492_vm1 = vmand %vm490_vm13, %vm491_vm14  ;;  %v486_v55 = vsel %vm485_vm0, %v1085_v62, 0.0 }
 0x10f   : >> { %v482_v52 = vadd.f32 %v481_v50, %v475_v48  ;;  %v480_v53 = vadd.f32 %v479_v49, %v473_v47  ;;  %v495_v54 = vsel %vm492_vm1, 1.0, %v919_v43  ;;  %v493_v59 = vsel %vm492_vm1, %v1088_v0, 0.0 }
 0x111   : >> { %v489_v56 = vadd.f32 %v488_v51, %v482_v52  ;;  %v487_v58 = vadd.f32 %v486_v55, %v480_v53 }
 0x113   : >> { %v496_v57 = vadd.f32 %v495_v54, %v489_v56  ;;  %v494_v60 = vadd.f32 %v493_v59, %v487_v58 }
 0x115   : >> { %741 = vrcp.f32 %v496_v57 }
 0x11a   : > { %404 = sbr.rel (!%p402_p1) target bundleno = 209 (0xd1), region = 94 }
 0x11b   : >> { %v742_v61 = vpop.eup %741 }
 0x11c   : >> { %v498_v63 = vmul.f32 %v742_v61, %v494_v60 }
 0x11e   : >> { %500 = vst [vmem:[%s499_s4] sm:$0xff] %v498_v63 }
 0x11f   : > { %860 = shalt.err (!%p857_p11)
}
 0x120   : > { %s920_s22 = smov 128   ;;  %s921_s18 = smov 8  }
 0x121   : > { %667 = dma.vmem_to_hbm [thread:$0]  (%p1007_p0), %s515_s20, 256, %s517_s11, %s502_s21, %s920_s22, %s920_s22, %s921_s18  }
 0x122 PF: > { %p689_p12 = scmp.ge.s32.totalorder %s907_s15, 2  ;;  %s531_s28 = sand.u32 1, %s895_s12  }
 0x123   : > { %s532_s29 = scalar_lea.sflag [#allocation5], %s531_s28 }
 0x124   : > { %p681_p13 = pnand %p689_p12, %p977_p6 }
 0x126   : > { %p682_p3 = pneg %p681_p13 }
 0x128   : > { %890 = dma.done.wait (%p682_p3), %s532_s29, 256  }
 0x129   : > { %892 = vsyncadd (%p682_p3), %s532_s29, 4294967040  ;;  %p17_p5 = scmp.ge.s32.totalorder %s997_s6, 5   ;;  %s1172_s12 = smov %s899_s13 }
 0x12a   : > { %s1173_s13 = smov %s903_s14  ;;  %s1174_s14 = smov %s1013_s10 }
 0x12b   : > { %s1175_s15 = smov %s997_s6  ;;  %19 = sbr.rel (!%p17_p5) target bundleno = 6 (0x6), region = 105 }
 0x130   :  { %538 = vsyncpa [#allocation4], 1 }
 0x131   :  { %540 = vsyncpa [#allocation4 + $0x1], 1 }
 0x132   :  { %541 = vsyncpa [#allocation7], 1 }
 0x133   :  { %542 = vsyncpa [#allocation5], 1 }
 0x134   :  { %544 = vsyncpa [#allocation5 + $0x1], 1 }

</bundles_post_ra>
